<compile_context>
chip_gen: v5e
topology: v5e:2x2
jax: 0.10.0
libtpu: 0.0.40
codegen_flags: <defaults>
</compile_context>

<pallas_src>
import functools

import jax
import jax.numpy as jnp
from jax import lax
from jax.experimental import pallas as pl
from jax.experimental.pallas import tpu as pltpu

# bf16 MXU operands, f32 accumulation (review #4).  Set to jnp.float32 for strict
# f32 parity; the tolerance in __main__ adapts to the choice.
MATMUL_DTYPE = jnp.bfloat16
BN_EPS = 1e-5  # PyTorch BatchNorm2d default


# ---------------------------------------------------------------------------
# Fused kernel: one MXU matmul (conv o linear folded) + BN batch stats + SiLU.
# Columns of the (M, CF) activation are (channel, feature), channel-major.
# ---------------------------------------------------------------------------
def _fused_kernel(a_ref, w_ref, bias_ref, g_ref, beta_ref, o_ref, *, c, f, count, eps):
    cf = c * f

    # Conv∘Linear folded matmul on the MXU (bf16 operands, f32 accumulation).
    y = jnp.dot(a_ref[...], w_ref[...],
                preferred_element_type=jnp.float32) + bias_ref[...]          # (M, CF)

    # In-kernel channel-fold matrices (no HBM traffic): column j belongs to
    # channel j // f, expressed as a range compare to avoid integer division.
    col = lax.broadcasted_iota(jnp.int32, (cf, c), 0)
    chn = lax.broadcasted_iota(jnp.int32, (cf, c), 1)
    seg = ((col >= chn * f) & (col < (chn + 1) * f)).astype(jnp.float32)     # (CF, C)
    col_t = lax.broadcasted_iota(jnp.int32, (c, cf), 1)
    chn_t = lax.broadcasted_iota(jnp.int32, (c, cf), 0)
    seg_t = ((col_t >= chn_t * f) & (col_t < (chn_t + 1) * f)).astype(jnp.float32)  # (C, CF)

    # Training-mode BatchNorm2d batch stats, two-pass (no E[x^2]-E[x]^2 cancellation).
    inv_count = 1.0 / count
    mean_c = jnp.dot(jnp.sum(y, axis=0, keepdims=True), seg,
                     preferred_element_type=jnp.float32) * inv_count         # (1, C)
    d = y - jnp.dot(mean_c, seg_t, preferred_element_type=jnp.float32)       # centered
    var_c = jnp.dot(jnp.sum(d * d, axis=0, keepdims=True), seg,
                    preferred_element_type=jnp.float32) * inv_count          # (1, C) biased
    scale_c = g_ref[...] * lax.rsqrt(var_c + eps)                            # (1, C)

    z = (d * jnp.dot(scale_c, seg_t, preferred_element_type=jnp.float32)
         + jnp.dot(beta_ref[...], seg_t, preferred_element_type=jnp.float32))
    o_ref[...] = (z * jax.nn.sigmoid(z)).astype(o_ref.dtype)                 # SiLU


# ---------------------------------------------------------------------------
# One-time weight folding (hoisted out of the per-call path, review #8):
#   Weff[(kh,cin,w'), (c,f)] = sum_kw Wconv[c,cin,kh,kw] * Wlin[f, w'-kw]
#   bias_eff[(c,f)]          = bconv[c] * sum_w Wlin[f,w] + blin[f]
# ---------------------------------------------------------------------------
def fold_params(params, x_shape):
    N, Cin, H, W = x_shape
    wc, bc = params["conv_w"], params["conv_b"]      # (C, Cin, KH, KW), (C,)
    wl, bl = params["lin_w"], params["lin_b"]        # (F, W), (F,)
    C, _, KH, KW = wc.shape
    F = wl.shape[0]
    ph, pw = KH // 2, KW // 2
    Wp = W + 2 * pw
    K = KH * Cin * Wp
    Kp = ((K + 127) // 128) * 128                    # MXU-aligned contraction
    CF = C * F

    # Shifted linear weight per conv kw tap, zero outside the valid width window.
    sh = jnp.stack([jnp.pad(wl, ((0, 0), (kw, Wp - W - kw))) for kw in range(KW)],
                   axis=0)                                                   # (KW, F, Wp)
    weff = jnp.einsum("cihk,kfw->hiwcf", wc, sh,
                      precision=lax.Precision.HIGHEST)                       # (KH,Cin,Wp,C,F)
    weff = jnp.pad(weff.reshape(K, CF), ((0, Kp - K), (0, 0)))
    bias_eff = (bc[:, None] * jnp.sum(wl, axis=1)[None, :] + bl[None, :]).reshape(1, CF)

    folded = {
        "weff": weff.astype(MATMUL_DTYPE),
        "bias": bias_eff.astype(jnp.float32),
        "gamma": params["bn_gamma"].reshape(1, C).astype(jnp.float32),
        "beta": params["bn_beta"].reshape(1, C).astype(jnp.float32),
    }
    meta = dict(C=C, F=F, KH=KH, ph=ph, pw=pw, K=K, Kp=Kp, CF=CF)
    return folded, meta


# ---------------------------------------------------------------------------
# Per-call forward: assemble A (row taps of the padded input) and run the kernel.
# ---------------------------------------------------------------------------
def forward(x, weff, bias, gamma, beta, *, C, F, KH, ph, pw, K, Kp, CF):
    N, Cin, H, W = x.shape
    M = N * H

    # A[(n,h), (kh,cin,w')] = x_pad[n, cin, h+kh, w']: only the KH row taps are
    # duplicated (~3x of the tiny padded input), no 9x im2col.
    # TODO(synk): for large inputs assemble A inside the kernel from halo blocks
    # (3-tap index_map / manual DMA gather) to cut HBM read traffic ~3x.
    xp = jnp.pad(x, ((0, 0), (0, 0), (ph, ph), (pw, pw)))
    a = jnp.stack([xp[:, :, kh:kh + H, :] for kh in range(KH)], axis=2)      # (N,Cin,KH,H,Wp)
    a = a.transpose(0, 3, 2, 1, 4).reshape(M, K)
    a = jnp.pad(a, ((0, 0), (0, Kp - K))).astype(MATMUL_DTYPE)

    kernel = functools.partial(_fused_kernel, c=C, f=F, count=float(M * F), eps=BN_EPS)
    out = pl.pallas_call(
        kernel,
        out_shape=jax.ShapeDtypeStruct((M, CF), jnp.float32),
        grid=(1,),                                   # single step: no pipeline overhead
        in_specs=[
            pl.BlockSpec((M, Kp), lambda i: (0, 0)),   # A            (32, 256)  bf16
            pl.BlockSpec((Kp, CF), lambda i: (0, 0)),  # Weff         (256, 256) bf16
            pl.BlockSpec((1, CF), lambda i: (0, 0)),   # fused bias   (1, 256)   f32
            pl.BlockSpec((1, C), lambda i: (0, 0)),    # gamma        (1, 8)     f32
            pl.BlockSpec((1, C), lambda i: (0, 0)),    # beta         (1, 8)     f32
        ],
        out_specs=pl.BlockSpec((M, CF), lambda i: (0, 0)),   # lane-dense (32, 256)
        compiler_params=pltpu.CompilerParams(
            dimension_semantics=("arbitrary",),
        ),
    )(a, weff, bias, gamma, beta)

    # (N*H, C*F) -> (N, C, H, F): PyTorch module's output layout.
    # TODO(synk): let a fused downstream consumer absorb this layout transpose.
    return out.reshape(N, H, C, F).transpose(0, 2, 1, 3)


# ---------------------------------------------------------------------------
# Pure-JAX reference (correctness check of the fused kernel).
# ---------------------------------------------------------------------------
def _reference(x, params, eps=BN_EPS):
    conv = lax.conv_general_dilated(
        x, params["conv_w"], window_strides=(1, 1), padding=((1, 1), (1, 1)),
        dimension_numbers=("NCHW", "OIHW", "NCHW"),
        precision=lax.Precision.HIGHEST,
    ) + params["conv_b"][None, :, None, None]
    lin = jnp.einsum("nchw,fw->nchf", conv, params["lin_w"],
                     precision=lax.Precision.HIGHEST) + params["lin_b"]
    mean = lin.mean(axis=(0, 2, 3), keepdims=True)
    var = lin.var(axis=(0, 2, 3), keepdims=True)     # biased, training-mode BN
    y = (lin - mean) * lax.rsqrt(var + eps)
    y = y * params["bn_gamma"][None, :, None, None] + params["bn_beta"][None, :, None, None]
    return y * jax.nn.sigmoid(y)


# ---------------------------------------------------------------------------
if __name__ == "__main__":
    N, Cin, H, W = 2, 4, 16, 16
    Cout, KH, KW = 8, 3, 3
    F = 32

    key = jax.random.PRNGKey(0)
    kx, kcw, kcb, klw, klb = jax.random.split(key, 5)

    x = jax.random.normal(kx, (N, Cin, H, W), dtype=jnp.float32)
    params = {
        "conv_w": 0.1 * jax.random.normal(kcw, (Cout, Cin, KH, KW), jnp.float32),
        "conv_b": 0.1 * jax.random.normal(kcb, (Cout,), jnp.float32),
        "lin_w": 0.1 * jax.random.normal(klw, (F, W), jnp.float32),
        "lin_b": 0.1 * jax.random.normal(klb, (F,), jnp.float32),
        "bn_gamma": jnp.ones((Cout,), jnp.float32),   # PyTorch BN default init
        "bn_beta": jnp.zeros((Cout,), jnp.float32),
    }

    # One-time weight folding (cached); only A assembly + the kernel run per call.
    folded, meta = fold_params(params, x.shape)
    fwd = jax.jit(functools.partial(forward, **meta))

    out = fwd(x, folded["weff"], folded["bias"], folded["gamma"], folded["beta"])
    jax.block_until_ready(out)
    assert out.shape == (N, Cout, H, F), out.shape

    ref = _reference(x, params)
    err = float(jnp.max(jnp.abs(out - ref)))
    tol = 5e-2 if MATMUL_DTYPE == jnp.bfloat16 else 1e-4
    assert err < tol, f"max abs error vs reference: {err} (tol {tol})"

    print("KERNEL_OK")
</pallas_src>

<mosaic_0001>
module attributes {stable_mosaic.version = 11 : i64} {
  func.func @_fused_kernel(%arg0: i32, %arg1: memref<32x256xbf16, #tpu.memory_space<vmem>>, %arg2: memref<256x256xbf16, #tpu.memory_space<vmem>>, %arg3: memref<1x256xf32, #tpu.memory_space<vmem>>, %arg4: memref<1x8xf32, #tpu.memory_space<vmem>>, %arg5: memref<1x8xf32, #tpu.memory_space<vmem>>, %arg6: memref<32x256xf32, #tpu.memory_space<vmem>>) attributes {dimension_semantics = [#tpu.dimension_semantics<arbitrary>], iteration_bounds = array<i64: 1>, scalar_prefetch = 0 : i64, scratch_operands = 0 : i64, tpu.core_type = #tpu.core_type<tc>, window_params = [{pipeline_mode = #tpu.pipeline_mode<synchronous>, transform_indices = @transform_0, window_bounds = array<i64: 32, 256>}, {pipeline_mode = #tpu.pipeline_mode<synchronous>, transform_indices = @transform_1, window_bounds = array<i64: 256, 256>}, {pipeline_mode = #tpu.pipeline_mode<synchronous>, transform_indices = @transform_2, window_bounds = array<i64: 1, 256>}, {pipeline_mode = #tpu.pipeline_mode<synchronous>, transform_indices = @transform_3, window_bounds = array<i64: 1, 8>}, {pipeline_mode = #tpu.pipeline_mode<synchronous>, transform_indices = @transform_4, window_bounds = array<i64: 1, 8>}, {pipeline_mode = #tpu.pipeline_mode<synchronous>, transform_indices = @transform_5, window_bounds = array<i64: 32, 256>}]} {
    %c0 = arith.constant 0 : index
    %c0_0 = arith.constant 0 : index
    %0 = vector.load %arg1[%c0, %c0_0] : memref<32x256xbf16, #tpu.memory_space<vmem>>, vector<32x256xbf16>
    %c0_1 = arith.constant 0 : index
    %c0_2 = arith.constant 0 : index
    %1 = vector.load %arg2[%c0_1, %c0_2] : memref<256x256xbf16, #tpu.memory_space<vmem>>, vector<256x256xbf16>
    %cst = arith.constant dense<0.000000e+00> : vector<32x256xf32>
    %2 = tpu.matmul %0, %1, %cst {dimension_numbers = #tpu.dot_dimension_numbers<[1], [0], [0], [1], [0, 0, 1, 1], [], []>} : vector<32x256xbf16>, vector<256x256xbf16>, vector<32x256xf32> -> vector<32x256xf32>
    %c0_3 = arith.constant 0 : index
    %c0_4 = arith.constant 0 : index
    %3 = vector.load %arg3[%c0_3, %c0_4] : memref<1x256xf32, #tpu.memory_space<vmem>>, vector<1x256xf32>
    %4 = vector.broadcast %3 : vector<1x256xf32> to vector<32x256xf32>
    %5 = arith.addf %2, %4 : vector<32x256xf32>
    %6 = tpu.iota {dimensions = array<i32: 0>} : vector<256x8xi32>
    %7 = tpu.iota {dimensions = array<i32: 1>} : vector<256x8xi32>
    %c32_i32 = arith.constant 32 : i32
    %8 = vector.broadcast %c32_i32 : i32 to vector<256x8xi32>
    %9 = arith.muli %7, %8 : vector<256x8xi32>
    %10 = arith.cmpi sge, %6, %9 : vector<256x8xi32>
    %c1_i32 = arith.constant 1 : i32
    %11 = vector.broadcast %c1_i32 : i32 to vector<256x8xi32>
    %12 = arith.addi %7, %11 : vector<256x8xi32>
    %c32_i32_5 = arith.constant 32 : i32
    %13 = vector.broadcast %c32_i32_5 : i32 to vector<256x8xi32>
    %14 = arith.muli %12, %13 : vector<256x8xi32>
    %15 = arith.cmpi slt, %6, %14 : vector<256x8xi32>
    %16 = arith.andi %10, %15 : vector<256x8xi1>
    %17 = arith.extui %16 : vector<256x8xi1> to vector<256x8xi32>
    %18 = arith.sitofp %17 : vector<256x8xi32> to vector<256x8xf32>
    %19 = tpu.iota {dimensions = array<i32: 1>} : vector<8x256xi32>
    %20 = tpu.iota {dimensions = array<i32: 0>} : vector<8x256xi32>
    %c32_i32_6 = arith.constant 32 : i32
    %21 = vector.broadcast %c32_i32_6 : i32 to vector<8x256xi32>
    %22 = arith.muli %20, %21 : vector<8x256xi32>
    %23 = arith.cmpi sge, %19, %22 : vector<8x256xi32>
    %c1_i32_7 = arith.constant 1 : i32
    %24 = vector.broadcast %c1_i32_7 : i32 to vector<8x256xi32>
    %25 = arith.addi %20, %24 : vector<8x256xi32>
    %c32_i32_8 = arith.constant 32 : i32
    %26 = vector.broadcast %c32_i32_8 : i32 to vector<8x256xi32>
    %27 = arith.muli %25, %26 : vector<8x256xi32>
    %28 = arith.cmpi slt, %19, %27 : vector<8x256xi32>
    %29 = arith.andi %23, %28 : vector<8x256xi1>
    %30 = arith.extui %29 : vector<8x256xi1> to vector<8x256xi32>
    %31 = arith.sitofp %30 : vector<8x256xi32> to vector<8x256xf32>
    %cst_9 = arith.constant dense<0.000000e+00> : vector<256xf32>
    %32 = vector.multi_reduction <add>, %5, %cst_9 [0] : vector<32x256xf32> to vector<256xf32>
    %33 = vector.shape_cast %32 : vector<256xf32> to vector<1x256xf32>
    %cst_10 = arith.constant dense<0.000000e+00> : vector<1x8xf32>
    %34 = tpu.matmul %33, %18, %cst_10 {dimension_numbers = #tpu.dot_dimension_numbers<[1], [0], [0], [1], [0, 0, 1, 1], [], []>} : vector<1x256xf32>, vector<256x8xf32>, vector<1x8xf32> -> vector<1x8xf32>
    %cst_11 = arith.constant 9.765625E-4 : f32
    %35 = vector.broadcast %cst_11 : f32 to vector<1x8xf32>
    %36 = arith.mulf %34, %35 : vector<1x8xf32>
    %cst_12 = arith.constant dense<0.000000e+00> : vector<1x256xf32>
    %37 = tpu.matmul %36, %31, %cst_12 {dimension_numbers = #tpu.dot_dimension_numbers<[1], [0], [0], [1], [0, 0, 1, 1], [], []>} : vector<1x8xf32>, vector<8x256xf32>, vector<1x256xf32> -> vector<1x256xf32>
    %38 = vector.broadcast %37 : vector<1x256xf32> to vector<32x256xf32>
    %39 = arith.subf %5, %38 : vector<32x256xf32>
    %40 = arith.mulf %39, %39 : vector<32x256xf32>
    %cst_13 = arith.constant dense<0.000000e+00> : vector<256xf32>
    %41 = vector.multi_reduction <add>, %40, %cst_13 [0] : vector<32x256xf32> to vector<256xf32>
    %42 = vector.shape_cast %41 : vector<256xf32> to vector<1x256xf32>
    %cst_14 = arith.constant dense<0.000000e+00> : vector<1x8xf32>
    %43 = tpu.matmul %42, %18, %cst_14 {dimension_numbers = #tpu.dot_dimension_numbers<[1], [0], [0], [1], [0, 0, 1, 1], [], []>} : vector<1x256xf32>, vector<256x8xf32>, vector<1x8xf32> -> vector<1x8xf32>
    %cst_15 = arith.constant 9.765625E-4 : f32
    %44 = vector.broadcast %cst_15 : f32 to vector<1x8xf32>
    %45 = arith.mulf %43, %44 : vector<1x8xf32>
    %c0_16 = arith.constant 0 : index
    %c0_17 = arith.constant 0 : index
    %46 = vector.load %arg4[%c0_16, %c0_17] : memref<1x8xf32, #tpu.memory_space<vmem>>, vector<1x8xf32>
    %cst_18 = arith.constant 9.99999974E-6 : f32
    %47 = vector.broadcast %cst_18 : f32 to vector<1x8xf32>
    %48 = arith.addf %45, %47 : vector<1x8xf32>
    %49 = math.rsqrt %48 : vector<1x8xf32>
    %50 = arith.mulf %46, %49 : vector<1x8xf32>
    %cst_19 = arith.constant dense<0.000000e+00> : vector<1x256xf32>
    %51 = tpu.matmul %50, %31, %cst_19 {dimension_numbers = #tpu.dot_dimension_numbers<[1], [0], [0], [1], [0, 0, 1, 1], [], []>} : vector<1x8xf32>, vector<8x256xf32>, vector<1x256xf32> -> vector<1x256xf32>
    %52 = vector.broadcast %51 : vector<1x256xf32> to vector<32x256xf32>
    %53 = arith.mulf %39, %52 : vector<32x256xf32>
    %c0_20 = arith.constant 0 : index
    %c0_21 = arith.constant 0 : index
    %54 = vector.load %arg5[%c0_20, %c0_21] : memref<1x8xf32, #tpu.memory_space<vmem>>, vector<1x8xf32>
    %cst_22 = arith.constant dense<0.000000e+00> : vector<1x256xf32>
    %55 = tpu.matmul %54, %31, %cst_22 {dimension_numbers = #tpu.dot_dimension_numbers<[1], [0], [0], [1], [0, 0, 1, 1], [], []>} : vector<1x8xf32>, vector<8x256xf32>, vector<1x256xf32> -> vector<1x256xf32>
    %56 = vector.broadcast %55 : vector<1x256xf32> to vector<32x256xf32>
    %57 = arith.addf %53, %56 : vector<32x256xf32>
    %58 = arith.negf %57 : vector<32x256xf32>
    %59 = math.exp %58 : vector<32x256xf32>
    %cst_23 = arith.constant 1.000000e+00 : f32
    %60 = vector.broadcast %cst_23 : f32 to vector<32x256xf32>
    %61 = arith.addf %60, %59 : vector<32x256xf32>
    %62 = arith.divf %60, %61 : vector<32x256xf32>
    %63 = arith.mulf %57, %62 : vector<32x256xf32>
    %c0_24 = arith.constant 0 : index
    %c0_25 = arith.constant 0 : index
    %64 = vector.load %arg6[%c0_24, %c0_25] : memref<32x256xf32, #tpu.memory_space<vmem>>, vector<32x256xf32>
    tpu.vector_store %arg6[%c0_24, %c0_25], %63 {strides = array<i32>} : memref<32x256xf32, #tpu.memory_space<vmem>>, vector<32x256xf32>,
    return
  }
  func.func @transform_0(%arg0: i32) -> (i32, i32) {
    %c0_i32 = arith.constant 0 : i32
    %c0_i32_0 = arith.constant 0 : i32
    %c0_i32_1 = arith.constant 0 : i32
    return %c0_i32, %c0_i32_0 : i32, i32
  }
  func.func @transform_1(%arg0: i32) -> (i32, i32) {
    %c0_i32 = arith.constant 0 : i32
    %c0_i32_0 = arith.constant 0 : i32
    %c0_i32_1 = arith.constant 0 : i32
    return %c0_i32, %c0_i32_0 : i32, i32
  }
  func.func @transform_2(%arg0: i32) -> (i32, i32) {
    %c0_i32 = arith.constant 0 : i32
    %c0_i32_0 = arith.constant 0 : i32
    %c0_i32_1 = arith.constant 0 : i32
    return %c0_i32, %c0_i32_0 : i32, i32
  }
  func.func @transform_3(%arg0: i32) -> (i32, i32) {
    %c0_i32 = arith.constant 0 : i32
    %c0_i32_0 = arith.constant 0 : i32
    %c0_i32_1 = arith.constant 0 : i32
    return %c0_i32, %c0_i32_0 : i32, i32
  }
  func.func @transform_4(%arg0: i32) -> (i32, i32) {
    %c0_i32 = arith.constant 0 : i32
    %c0_i32_0 = arith.constant 0 : i32
    %c0_i32_1 = arith.constant 0 : i32
    return %c0_i32, %c0_i32_0 : i32, i32
  }
  func.func @transform_5(%arg0: i32) -> (i32, i32) {
    %c0_i32 = arith.constant 0 : i32
    %c0_i32_0 = arith.constant 0 : i32
    %c0_i32_1 = arith.constant 0 : i32
    return %c0_i32, %c0_i32_0 : i32, i32
  }
}

</mosaic_0001>

<bundles_post_ra>
// kernel: forward.1
= control target key start
LH: loop header
LB: loop body
LE: loop exit
PB: predicated region body
PF: predicated region fallthrough
CT: control target
= control target key end

     0   :  { %s2235_s1 = inlined_call_operand.vmem [shape: bf16[256,256], index: 1, kind: input, shape index: {}]   ;;  %s2236_s0 = inlined_call_operand.vmem [shape: bf16[32,256], index: 0, kind: input, shape index: {}]   ;;  %s2237_s2 = inlined_call_operand.vmem [shape: f32[1,256], index: 2, kind: input, shape index: {}]   ;;  %s2238_s3 = inlined_call_operand.vmem [shape: f32[1,8], index: 3, kind: input, shape index: {}]   ;;  %s2239_s4 = inlined_call_operand.vmem [shape: f32[1,8], index: 4, kind: input, shape index: {}]   ;;  %s2240_s5 = inlined_call_operand.vmem [shape: f32[32,256], index: 5, kind: output, shape index: {}]  }
   0x1   :  { %v1076_v0 = vld [vmem:[%s2235_s1 + $0x70] sm:$0xf]  ;;  %v1283_v1 = vld [vmem:[%s2235_s1 + $0x74] sm:$0xf0]  ;;  %v1282_v5 = vld [vmem:[%s2235_s1 + $0x74] sm:$0xf] }
   0x2   :  { %v1140_v2 = vld [vmem:[%s2235_s1 + $0xf0] sm:$0xf]  ;;  %v1077_v3 = vor.u32 %v1283_v1, %v1076_v0  ;;  %v1299_v4 = vld [vmem:[%s2235_s1 + $0xf4] sm:$0xf0]  ;;  %v1078_v6 = vld [vmem:[%s2235_s1 + $0x78] sm:$0xf0] }
   0x3   :  { %v1141_v7 = vor.u32 %v1299_v4, %v1140_v2  ;;  %v1081_v8 = vor.u32 %v1282_v5, %v1078_v6  ;;  %v1298_v9 = vld [vmem:[%s2235_s1 + $0xf4] sm:$0xf]  ;;  %v1142_v10 = vld [vmem:[%s2235_s1 + $0xf8] sm:$0xf0]  ;;  %v1068_v11 = vld [vmem:[%s2235_s1 + $0x60] sm:$0xf] }
   0x4   :  { %242 = vmatpush.bf16.msra.mxu0 %v1077_v3  ;;  %v1145_v12 = vor.u32 %v1298_v9, %v1142_v10  ;;  %v1281_v13 = vld [vmem:[%s2235_s1 + $0x64] sm:$0xf0]  ;;  %v1132_v14 = vld [vmem:[%s2235_s1 + $0xe0] sm:$0xf]  ;;  %v1280_v18 = vld [vmem:[%s2235_s1 + $0x64] sm:$0xf] }
   0x5   :  { %v1297_v15 = vld [vmem:[%s2235_s1 + $0xe4] sm:$0xf0]  ;;  %261 = vmatpush.bf16.msra.mxu1 %v1141_v7  ;;  %280 = vmatpush.bf16.msra.mxu2 %v1081_v8  ;;  %v1069_v16 = vor.u32 %v1281_v13, %v1068_v11  ;;  %v1070_v19 = vld [vmem:[%s2235_s1 + $0x68] sm:$0xf0]  ;;  %v1296_v20 = vld [vmem:[%s2235_s1 + $0xe4] sm:$0xf] }
   0x6   :  { %v1133_v17 = vor.u32 %v1297_v15, %v1132_v14  ;;  %299 = vmatpush.bf16.msra.mxu3 %v1145_v12  ;;  %v1073_v21 = vor.u32 %v1280_v18, %v1070_v19  ;;  %v1134_v22 = vld [vmem:[%s2235_s1 + $0xe8] sm:$0xf0]  ;;  %v1060_v23 = vld [vmem:[%s2235_s1 + $0x50] sm:$0xf]  ;;  %v1279_v24 = vld [vmem:[%s2235_s1 + $0x54] sm:$0xf0] }
   0x7   :  { %v1137_v25 = vor.u32 %v1296_v20, %v1134_v22  ;;  %v1124_v26 = vld [vmem:[%s2235_s1 + $0xd0] sm:$0xf]  ;;  %v1295_v27 = vld [vmem:[%s2235_s1 + $0xd4] sm:$0xf0]  ;;  %v1278_v28 = vld [vmem:[%s2235_s1 + $0x54] sm:$0xf]  ;;  %v1061_v29 = vor.u32 %v1279_v24, %v1060_v23 }
   0x8   :  { %243 = vmatpush.bf16.msra.mxu0 %v1069_v16  ;;  %v1062_v30 = vld [vmem:[%s2235_s1 + $0x58] sm:$0xf0]  ;;  %v1294_v31 = vld [vmem:[%s2235_s1 + $0xd4] sm:$0xf]  ;;  %v1125_v33 = vor.u32 %v1295_v27, %v1124_v26  ;;  %v1052_v35 = vld [vmem:[%s2235_s1 + $0x40] sm:$0xf] }
   0x9   :  { %v1126_v32 = vld [vmem:[%s2235_s1 + $0xd8] sm:$0xf0]  ;;  %262 = vmatpush.bf16.msra.mxu1 %v1133_v17  ;;  %281 = vmatpush.bf16.msra.mxu2 %v1073_v21  ;;  %v1065_v34 = vor.u32 %v1278_v28, %v1062_v30  ;;  %v1277_v36 = vld [vmem:[%s2235_s1 + $0x44] sm:$0xf0]  ;;  %v1116_v37 = vld [vmem:[%s2235_s1 + $0xc0] sm:$0xf] }
   0xa   :  { %300 = vmatpush.bf16.msra.mxu3 %v1137_v25  ;;  %v1129_v38 = vor.u32 %v1294_v31, %v1126_v32  ;;  %v1293_v39 = vld [vmem:[%s2235_s1 + $0xc4] sm:$0xf0]  ;;  %v1276_v40 = vld [vmem:[%s2235_s1 + $0x44] sm:$0xf]  ;;  %v1054_v41 = vld [vmem:[%s2235_s1 + $0x48] sm:$0xf0]  ;;  %v1053_v44 = vor.u32 %v1277_v36, %v1052_v35 }
   0xb   :  { %v1292_v42 = vld [vmem:[%s2235_s1 + $0xc4] sm:$0xf]  ;;  %v1118_v43 = vld [vmem:[%s2235_s1 + $0xc8] sm:$0xf0]  ;;  %v1117_v45 = vor.u32 %v1293_v39, %v1116_v37  ;;  %v1057_v46 = vor.u32 %v1276_v40, %v1054_v41  ;;  %v1044_v47 = vld [vmem:[%s2235_s1 + $0x30] sm:$0xf] }
   0xc   :  { %244 = vmatpush.bf16.msra.mxu0 %v1061_v29  ;;  %v1275_v48 = vld [vmem:[%s2235_s1 + $0x34] sm:$0xf0]  ;;  %v1108_v49 = vld [vmem:[%s2235_s1 + $0xb0] sm:$0xf]  ;;  %v1121_v50 = vor.u32 %v1292_v42, %v1118_v43  ;;  %v1274_v52 = vld [vmem:[%s2235_s1 + $0x34] sm:$0xf] }
   0xd   :  { %263 = vmatpush.bf16.msra.mxu1 %v1125_v33  ;;  %282 = vmatpush.bf16.msra.mxu2 %v1065_v34  ;;  %v1291_v51 = vld [vmem:[%s2235_s1 + $0xb4] sm:$0xf0]  ;;  %v1046_v53 = vld [vmem:[%s2235_s1 + $0x38] sm:$0xf0]  ;;  %v1290_v54 = vld [vmem:[%s2235_s1 + $0xb4] sm:$0xf]  ;;  %v1045_v56 = vor.u32 %v1275_v48, %v1044_v47 }
   0xe   :  { %301 = vmatpush.bf16.msra.mxu3 %v1129_v38  ;;  %v1110_v55 = vld [vmem:[%s2235_s1 + $0xb8] sm:$0xf0]  ;;  %v1109_v57 = vor.u32 %v1291_v51, %v1108_v49  ;;  %v1049_v58 = vor.u32 %v1274_v52, %v1046_v53  ;;  %v1036_v59 = vld [vmem:[%s2235_s1 + $0x20] sm:$0xf]  ;;  %v1273_v60 = vld [vmem:[%s2235_s1 + $0x24] sm:$0xf0] }
   0xf   :  { %v1100_v61 = vld [vmem:[%s2235_s1 + $0xa0] sm:$0xf]  ;;  %v1113_v62 = vor.u32 %v1290_v54, %v1110_v55  ;;  %v1289_v63 = vld [vmem:[%s2235_s1 + $0xa4] sm:$0xf0]  ;;  %v1272_v0 = vld [vmem:[%s2235_s1 + $0x24] sm:$0xf]  ;;  %v1037_v4 = vor.u32 %v1273_v60, %v1036_v59 }
  0x10   :  { %245 = vmatpush.bf16.msra.mxu0 %v1053_v44  ;;  %v1038_v1 = vld [vmem:[%s2235_s1 + $0x28] sm:$0xf0]  ;;  %v1288_v2 = vld [vmem:[%s2235_s1 + $0xa4] sm:$0xf]  ;;  %v1101_v5 = vor.u32 %v1289_v63, %v1100_v61  ;;  %v1028_v7 = vld [vmem:[%s2235_s1 + $0x10] sm:$0xf]  ;;  %v318_v44 = vlaneseq }
  0x11   :  { %264 = vmatpush.bf16.msra.mxu1 %v1117_v45  ;;  %283 = vmatpush.bf16.msra.mxu2 %v1057_v46  ;;  %v1102_v3 = vld [vmem:[%s2235_s1 + $0xa8] sm:$0xf0]  ;;  %v1041_v6 = vor.u32 %v1272_v0, %v1038_v1  ;;  %v1271_v8 = vld [vmem:[%s2235_s1 + $0x14] sm:$0xf0]  ;;  %v1092_v9 = vld [vmem:[%s2235_s1 + $0x90] sm:$0xf] }
  0x12   :  { %302 = vmatpush.bf16.msra.mxu3 %v1121_v50  ;;  %v1105_v10 = vor.u32 %v1288_v2, %v1102_v3  ;;  %v1287_v11 = vld [vmem:[%s2235_s1 + $0x94] sm:$0xf0]  ;;  %v1270_v12 = vld [vmem:[%s2235_s1 + $0x14] sm:$0xf]  ;;  %v1030_v13 = vld [vmem:[%s2235_s1 + $0x18] sm:$0xf0]  ;;  %v1029_v16 = vor.u32 %v1271_v8, %v1028_v7 }
  0x13   :  { %v1286_v14 = vld [vmem:[%s2235_s1 + $0x94] sm:$0xf]  ;;  %v1094_v15 = vld [vmem:[%s2235_s1 + $0x98] sm:$0xf0]  ;;  %v1093_v17 = vor.u32 %v1287_v11, %v1092_v9  ;;  %v1033_v18 = vor.u32 %v1270_v12, %v1030_v13  ;;  %v1020_v19 = vld [vmem:[%s2235_s1] sm:$0xf] }
  0x14   :  { %246 = vmatpush.bf16.msra.mxu0 %v1045_v56  ;;  %v1269_v20 = vld [vmem:[%s2235_s1 + $0x4] sm:$0xf0]  ;;  %v1084_v21 = vld [vmem:[%s2235_s1 + $0x80] sm:$0xf]  ;;  %v1097_v22 = vor.u32 %v1286_v14, %v1094_v15  ;;  %v1268_v24 = vld [vmem:[%s2235_s1 + $0x4] sm:$0xf] }
  0x15   :  { %265 = vmatpush.bf16.msra.mxu1 %v1109_v57  ;;  %284 = vmatpush.bf16.msra.mxu2 %v1049_v58  ;;  %v1285_v23 = vld [vmem:[%s2235_s1 + $0x84] sm:$0xf0]  ;;  %v1022_v25 = vld [vmem:[%s2235_s1 + $0x8] sm:$0xf0]  ;;  %v1284_v26 = vld [vmem:[%s2235_s1 + $0x84] sm:$0xf]  ;;  %v1021_v28 = vor.u32 %v1269_v20, %v1020_v19 }
  0x16   :  { %303 = vmatpush.bf16.msra.mxu3 %v1113_v62  ;;  %v1086_v27 = vld [vmem:[%s2235_s1 + $0x88] sm:$0xf0]  ;;  %v1004_v29 = vld [vmem:[%s2236_s0] sm:$0xf]  ;;  %v1265_v30 = vld [vmem:[%s2236_s0 + $0x4] sm:$0xf0]  ;;  %v1085_v31 = vor.u32 %v1285_v23, %v1084_v21  ;;  %v1025_v32 = vor.u32 %v1268_v24, %v1022_v25 }
  0x17   :  { %v1264_v33 = vld [vmem:[%s2236_s0 + $0x4] sm:$0xf]  ;;  %v1006_v34 = vld [vmem:[%s2236_s0 + $0x8] sm:$0xf0]  ;;  %v1089_v35 = vor.u32 %v1284_v26, %v1086_v27  ;;  %v1005_v36 = vor.u32 %v1265_v30, %v1004_v29  ;;  %v1012_v38 = vld [vmem:[%s2236_s0 + $0x10] sm:$0xf] }
  0x18   :  { %247 = vmatpush.bf16.msra.mxu0 %v1037_v4  ;;  %v1009_v37 = vor.u32 %v1264_v33, %v1006_v34  ;;  %v1267_v39 = vld [vmem:[%s2236_s0 + $0x14] sm:$0xf0]  ;;  %v1266_v40 = vld [vmem:[%s2236_s0 + $0x14] sm:$0xf]  ;;  %v1014_v41 = vld [vmem:[%s2236_s0 + $0x18] sm:$0xf0] }
  0x19   :  { %266 = vmatpush.bf16.msra.mxu1 %v1101_v5  ;;  %285 = vmatpush.bf16.msra.mxu2 %v1041_v6  ;;  %v1013_v42 = vor.u32 %v1267_v39, %v1012_v38  ;;  %v1017_v43 = vor.u32 %v1266_v40, %v1014_v41  ;;  %v1582_v45 = vand.u32 127, %v318_v44  ;;  %v1584_v46 = vshrl.u32 %v318_v44, 7 }
  0x1a   :  { %304 = vmatpush.bf16.msra.mxu3 %v1105_v10  ;;  %v1335_v52 = vmov 1.0   ;;  %v2256_v62 = vmov 0  ;;  %v2260_v4 = vmov 0  ;;  %v2264_v6 = vmov 0 }
  0x1b   :  { %v386_v47 = vadd.s32 1, %v1582_v45  ;;  %v334_v48 = vadd.s32 120, %v1584_v46  ;;  %v1589_v49 = vmul.u32 32, %v1582_v45  ;;  %v333_v51 = vadd.s32 112, %v1584_v46 }
  0x1c   :  { %248 = vmatpush.bf16.msra.mxu0 %v1029_v16  ;;  %v332_v53 = vadd.s32 104, %v1584_v46  ;;  %v331_v54 = vadd.s32 96, %v1584_v46  ;;  %v350_v55 = vadd.s32 248, %v1584_v46  ;;  %v330_v57 = vadd.s32 88, %v1584_v46 }
  0x1d   :  { %267 = vmatpush.bf16.msra.mxu1 %v1093_v17  ;;  %286 = vmatpush.bf16.msra.mxu2 %v1033_v18  ;;  %v1591_v50 = vmul.u32 32, %v386_v47  ;;  %vm369_vm0 = vcmp.ge.s32.totalorder %v334_v48, %v1589_v49  ;;  %vm368_vm3 = vcmp.ge.s32.totalorder %v333_v51, %v1589_v49  ;;  %v349_v58 = vadd.s32 240, %v1584_v46  ;;  %v56_v47 = vld [vmem:[%s2237_s2] sm:$0x3] }
  0x1e   :  { %305 = vmatpush.bf16.msra.mxu3 %v1097_v22  ;;  %vm367_vm6 = vcmp.ge.s32.totalorder %v332_v53, %v1589_v49  ;;  %vm366_vm9 = vcmp.ge.s32.totalorder %v331_v54, %v1589_v49  ;;  %vm385_vm11 = vcmp.ge.s32.totalorder %v350_v55, %v1589_v49  ;;  %v329_v60 = vadd.s32 80, %v1584_v46 }
  0x1f   :  { %vm403_vm1 = vcmp.lt.s32.totalorder %v334_v48, %v1591_v50  ;;  %vm402_vm4 = vcmp.lt.s32.totalorder %v333_v51, %v1591_v50  ;;  %vm401_vm7 = vcmp.lt.s32.totalorder %v332_v53, %v1591_v50  ;;  %vm400_vm10 = vcmp.lt.s32.totalorder %v331_v54, %v1591_v50 }
  0x20   :  { %249 = vmatpush.bf16.msra.mxu0 %v1021_v28  ;;  %vm435_vm2 = vmand %vm369_vm0, %vm403_vm1  ;;  %vm419_vm12 = vcmp.lt.s32.totalorder %v350_v55, %v1591_v50  ;;  %v348_v61 = vadd.s32 232, %v1584_v46  ;;  %vm365_vm15 = vcmp.ge.s32.totalorder %v330_v57, %v1589_v49  ;;  %vm399_vm0 = vcmp.lt.s32.totalorder %v330_v57, %v1591_v50 }
  0x21   :  { %268 = vmatpush.bf16.msra.mxu1 %v1085_v31  ;;  %287 = vmatpush.bf16.msra.mxu2 %v1025_v32  ;;  %vm434_vm5 = vmand %vm368_vm3, %vm402_vm4  ;;  %vm384_vm1 = vcmp.ge.s32.totalorder %v349_v58, %v1589_v49  ;;  %vm364_vm4 = vcmp.ge.s32.totalorder %v329_v60, %v1589_v49  ;;  %v328_v63 = vadd.s32 72, %v1584_v46  ;;  %v347_v0 = vadd.s32 224, %v1584_v46 }
  0x22   :  { %306 = vmatpush.bf16.msra.mxu3 %v1089_v35  ;;  %vm433_vm8 = vmand %vm367_vm6, %vm401_vm7  ;;  %vm383_vm6 = vcmp.ge.s32.totalorder %v348_v61, %v1589_v49  ;;  %vm417_vm7 = vcmp.lt.s32.totalorder %v348_v61, %v1591_v50  ;;  %v327_v2 = vadd.s32 64, %v1584_v46  ;;  %v346_v3 = vadd.s32 216, %v1584_v46 }
  0x23   :  { %250 = vmatmul.bf16.vlgmr.msra.gmra.mxu0 %v1005_v36  ;;  %vm1612_vm13 = vmand %vm366_vm9, %vm400_vm10  ;;  %v326_v7 = vadd.s32 56, %v1584_v46  ;;  %v345_v8 = vadd.s32 208, %v1584_v46  ;;  %v325_v10 = vadd.s32 48, %v1584_v46  ;;  %v344_v11 = vadd.s32 200, %v1584_v46 }
  0x24   :  { %269 = vmatmul.bf16.vlgmr.msra.gmra.mxu1 %v1009_v37  ;;  %288 = vmatmul.bf16.vlgmr.msra.gmra.mxu2 %v1005_v36  ;;  %vm1622_vm14 = vmand %vm385_vm11, %vm419_vm12  ;;  %vm363_vm11 = vcmp.ge.s32.totalorder %v328_v63, %v1589_v49  ;;  %vm397_vm12 = vcmp.lt.s32.totalorder %v328_v63, %v1591_v50  ;;  %v2268_v12 = vmov 0  ;;  %v2272_v14 = vmov 0 }
  0x25   :  { %307 = vmatmul.bf16.vlgmr.msra.gmra.mxu3 %v1009_v37  ;;  %1180 = vmatpush.msk.msrb.mxu2 %vm435_vm2, %v1335_v52  ;;  %vm431_vm3 = vmand %vm365_vm15, %vm399_vm0  ;;  %vm416_vm15 = vcmp.lt.s32.totalorder %v347_v0, %v1591_v50  ;;  %v324_v15 = vadd.s32 40, %v1584_v46  ;;  %v343_v16 = vadd.s32 192, %v1584_v46  ;;  %v323_v19 = vadd.s32 32, %v1584_v46 }
  0x26   :  { %1216 = vmatpush.msk.msrb.mxu0 %vm435_vm2, %v1335_v52  ;;  %1196 = vmatpush.msk.msrb.mxu1 %vm1622_vm14, %v1335_v52  ;;  %vm418_vm2 = vcmp.lt.s32.totalorder %v349_v58, %v1591_v50  ;;  %vm1662_vm10 = vmand %vm383_vm6, %vm417_vm7  ;;  %v342_v20 = vadd.s32 184, %v1584_v46  ;;  %v2276_v22 = vmov 0  ;;  %v2280_v24 = vmov 0 }
  0x27   :  { %1181 = vmatpush.msk.msrb.mxu2 %vm434_vm5, %v1335_v52  ;;  %v2261_v4 = vsel %vm1662_vm10, 4294967295, %v2260_v4  ;;  %vm1673_vm0 = vmand %vm363_vm11, %vm397_vm12  ;;  %vm395_vm11 = vcmp.lt.s32.totalorder %v326_v7, %v1591_v50  ;;  %vm380_vm12 = vcmp.ge.s32.totalorder %v345_v8, %v1589_v49  ;;  %v322_v25 = vadd.s32 24, %v1584_v46 }
  0x28   :  { %1217 = vmatpush.msk.msrb.mxu0 %vm434_vm5, %v1335_v52  ;;  %vm398_vm5 = vcmp.lt.s32.totalorder %v329_v60, %v1591_v50  ;;  %v341_v26 = vadd.s32 176, %v1584_v46  ;;  %v321_v28 = vadd.s32 16, %v1584_v46  ;;  %v340_v29 = vadd.s32 168, %v1584_v46 }
  0x29   :  { %1182 = vmatpush.msk.msrb.mxu2 %vm433_vm8, %v1335_v52  ;;  %vm1652_vm9 = vmand %vm364_vm4, %vm398_vm5  ;;  %vm415_vm4 = vcmp.lt.s32.totalorder %v346_v3, %v1591_v50  ;;  %v2284_v30 = vmov 0  ;;  %v2288_v33 = vmov 0  ;;  %v320_v34 = vadd.s32 8, %v1584_v46 }
  0x2a   :  { %1218 = vmatpush.msk.msrb.mxu0 %vm433_vm8, %v1335_v52  ;;  %vm1643_vm8 = vmand %vm384_vm1, %vm418_vm2  ;;  %vm362_vm1 = vcmp.ge.s32.totalorder %v327_v2, %v1589_v49  ;;  %vm396_vm2 = vcmp.lt.s32.totalorder %v327_v2, %v1591_v50  ;;  %v339_v35 = vadd.s32 160, %v1584_v46  ;;  %v338_v39 = vadd.s32 152, %v1584_v46 }
  0x2b   :  { %1183 = vmatpush.msk.msrb.mxu2 %vm1612_vm13, %v1335_v52  ;;  %v2257_v62 = vsel %vm1643_vm8, 4294967295, %v2256_v62  ;;  %1197 = vmatpush.msk.msrb.mxu1 %vm1643_vm8, %v1335_v52  ;;  %vm1696_vm6 = vmand %vm362_vm1, %vm396_vm2  ;;  %vm360_vm1 = vcmp.ge.s32.totalorder %v325_v10, %v1589_v49  ;;  %vm394_vm2 = vcmp.lt.s32.totalorder %v325_v10, %v1591_v50  ;;  %v2292_v41 = vmov 0 }
  0x2c   :  { %1219 = vmatpush.msk.msrb.mxu0 %vm1612_vm13, %v1335_v52  ;;  %vm382_vm13 = vcmp.ge.s32.totalorder %v347_v0, %v1589_v49  ;;  %v337_v44 = vadd.s32 144, %v1584_v46  ;;  %v336_v51 = vadd.s32 136, %v1584_v46  ;;  %v335_v53 = vadd.s32 128, %v1584_v46 }
  0x2d   :  { %1184 = vmatpush.msk.msrb.mxu2 %vm431_vm3, %v1335_v52  ;;  %1198 = vmatpush.msk.msrb.mxu1 %vm1662_vm10, %v1335_v52  ;;  %vm1684_vm5 = vmand %vm382_vm13, %vm416_vm15  ;;  %vm414_vm13 = vcmp.lt.s32.totalorder %v345_v8, %v1591_v50  ;;  %vm409_vm10 = vcmp.lt.s32.totalorder %v340_v29, %v1591_v50  ;;  %v58_v56 = vperm.slane %v56_v47, 0  ;;  %v516_v0 = vadd.s32 128, %v1582_v45 }
  0x2e   :  { %1220 = vmatpush.msk.msrb.mxu0 %vm431_vm3, %v1335_v52  ;;  %vm381_vm3 = vcmp.ge.s32.totalorder %v346_v3, %v1589_v49  ;;  %v2265_v6 = vsel %vm1684_vm5, 4294967295, %v2264_v6  ;;  %v517_v1 = vmul.u32 32, %v1584_v46  ;;  %v520_v2 = vadd.s32 1, %v1584_v46 }
  0x2f   :  { %1185 = vmatpush.msk.msrb.mxu2 %vm1652_vm9, %v1335_v52  ;;  %1199 = vmatpush.msk.msrb.mxu1 %vm1684_vm5, %v1335_v52  ;;  %vm1705_vm7 = vmand %vm381_vm3, %vm415_vm4  ;;  %vm379_vm3 = vcmp.ge.s32.totalorder %v344_v11, %v1589_v49  ;;  %vm413_vm4 = vcmp.lt.s32.totalorder %v344_v11, %v1591_v50 }
  0x30   :  { %1221 = vmatpush.msk.msrb.mxu0 %vm1652_vm9, %v1335_v52  ;;  %v2269_v12 = vsel %vm1705_vm7, 4294967295, %v2268_v12  ;;  %vm361_vm9 = vcmp.ge.s32.totalorder %v326_v7, %v1589_v49  ;;  %vm1727_vm5 = vmand %vm380_vm12, %vm414_vm13  ;;  %vm393_vm12 = vcmp.lt.s32.totalorder %v324_v15, %v1591_v50  ;;  %vm378_vm13 = vcmp.ge.s32.totalorder %v343_v16, %v1589_v49 }
  0x31   :  { %1186 = vmatpush.msk.msrb.mxu2 %vm1673_vm0, %v1335_v52  ;;  %1200 = vmatpush.msk.msrb.mxu1 %vm1705_vm7, %v1335_v52  ;;  %vm1716_vm15 = vmand %vm361_vm9, %vm395_vm11  ;;  %v2273_v14 = vsel %vm1727_vm5, 4294967295, %v2272_v14  ;;  %vm359_vm11 = vcmp.ge.s32.totalorder %v324_v15, %v1589_v49  ;;  %v521_v7 = vmul.u32 32, %v520_v2 }
  0x32   :  { %1222 = vmatpush.msk.msrb.mxu0 %vm1673_vm0, %v1335_v52  ;;  %vm1741_vm9 = vmand %vm360_vm1, %vm394_vm2  ;;  %vm412_vm2 = vcmp.lt.s32.totalorder %v343_v16, %v1591_v50 }
  0x33   :  { %255 = vmatmul.bf16.gmra.mxu0 %v1013_v42  ;;  %1187 = vmatpush.msk.msrb.mxu2 %vm1696_vm6, %v1335_v52  ;;  %vm1752_vm0 = vmand %vm379_vm3, %vm413_vm4  ;;  %vm358_vm3 = vcmp.ge.s32.totalorder %v323_v19, %v1589_v49  ;;  %vm392_vm4 = vcmp.lt.s32.totalorder %v323_v19, %v1591_v50 }
  0x34   :  { %274 = vmatmul.bf16.gmra.mxu1 %v1017_v43  ;;  %293 = vmatmul.bf16.gmra.mxu2 %v1013_v42  ;;  %v2277_v22 = vsel %vm1752_vm0, 4294967295, %v2276_v22  ;;  %vm1762_vm1 = vmand %vm359_vm11, %vm393_vm12  ;;  %vm411_vm11 = vcmp.lt.s32.totalorder %v342_v20, %v1591_v50 }
  0x35   :  { %312 = vmatmul.bf16.gmra.mxu3 %v1017_v43  ;;  %1188 = vmatpush.msk.msrb.mxu2 %vm1716_vm15, %v1335_v52  ;;  %vm1773_vm7 = vmand %vm378_vm13, %vm412_vm2  ;;  %vm391_vm2 = vcmp.lt.s32.totalorder %v322_v25, %v1591_v50  ;;  %v2296_v43 = vmov 0 }
  0x36   :  { %1201 = vmatpush.msk.msrb.mxu1 %vm1727_vm5, %v1335_v52  ;;  %vm377_vm5 = vcmp.ge.s32.totalorder %v342_v20, %v1589_v49  ;;  %v2281_v24 = vsel %vm1773_vm7, 4294967295, %v2280_v24  ;;  %1223 = vmatpush.msk.msrb.mxu0 %vm1696_vm6, %v1335_v52  ;;  %vm1786_vm12 = vmand %vm358_vm3, %vm392_vm4  ;;  %vm357_vm6 = vcmp.ge.s32.totalorder %v322_v25, %v1589_v49  ;;  %vm376_vm3 = vcmp.ge.s32.totalorder %v341_v26, %v1589_v49 }
  0x37   :  { %1189 = vmatpush.msk.msrb.mxu2 %vm1741_vm9, %v1335_v52  ;;  %vm1795_vm13 = vmand %vm377_vm5, %vm411_vm11  ;;  %vm410_vm4 = vcmp.lt.s32.totalorder %v341_v26, %v1591_v50  ;;  %vm356_vm5 = vcmp.ge.s32.totalorder %v321_v28, %v1589_v49  ;;  %vm390_vm11 = vcmp.lt.s32.totalorder %v321_v28, %v1591_v50 }
  0x38   :  { %1202 = vmatpush.msk.msrb.mxu1 %vm1752_vm0, %v1335_v52  ;;  %v2285_v30 = vsel %vm1795_vm13, 4294967295, %v2284_v30  ;;  %vm375_vm0 = vcmp.ge.s32.totalorder %v340_v29, %v1589_v49  ;;  %vm1819_vm8 = vmand %vm376_vm3, %vm410_vm4  ;;  %1224 = vmatpush.msk.msrb.mxu0 %vm1716_vm15, %v1335_v52  ;;  %vm389_vm3 = vcmp.lt.s32.totalorder %v320_v34, %v1591_v50  ;;  %vm374_vm4 = vcmp.ge.s32.totalorder %v339_v35, %v1589_v49 }
  0x39   :  { %1190 = vmatpush.msk.msrb.mxu2 %vm1762_vm1, %v1335_v52  ;;  %v2289_v33 = vsel %vm1819_vm8, 4294967295, %v2288_v33  ;;  %vm1845_vm15 = vmand %vm375_vm0, %vm409_vm10  ;;  %vm354_vm10 = vcmp.ge.s32.totalorder %v1584_v46, %v1589_v49  ;;  %vm388_vm0 = vcmp.lt.s32.totalorder %v1584_v46, %v1591_v50  ;;  %v59_v46 = vperm.slane %v56_v47, 1 }
  0x3a   :  { %1203 = vmatpush.msk.msrb.mxu1 %vm1773_vm7, %v1335_v52  ;;  %vm1806_vm7 = vmand %vm357_vm6, %vm391_vm2  ;;  %v2293_v41 = vsel %vm1845_vm15, 4294967295, %v2292_v41  ;;  %vm355_vm2 = vcmp.ge.s32.totalorder %v320_v34, %v1589_v49  ;;  %1225 = vmatpush.msk.msrb.mxu0 %vm1741_vm9, %v1335_v52 }
  0x3b   :  { %1191 = vmatpush.msk.msrb.mxu2 %vm1786_vm12, %v1335_v52  ;;  %vm1833_vm6 = vmand %vm356_vm5, %vm390_vm11  ;;  %vm408_vm11 = vcmp.lt.s32.totalorder %v339_v35, %v1591_v50 }
  0x3c   :  { %1204 = vmatpush.msk.msrb.mxu1 %vm1795_vm13, %v1335_v52  ;;  %vm1855_vm5 = vmand %vm355_vm2, %vm389_vm3  ;;  %vm373_vm2 = vcmp.ge.s32.totalorder %v338_v39, %v1589_v49  ;;  %vm407_vm3 = vcmp.lt.s32.totalorder %v338_v39, %v1591_v50  ;;  %1226 = vmatpush.msk.msrb.mxu0 %vm1762_vm1, %v1335_v52  ;;  %vm1945_vm1 = vcmp.ge.s32.totalorder %v1582_v45, %v517_v1 }
  0x3d   :  { %1192 = vmatpush.msk.msrb.mxu2 %vm1806_vm7, %v1335_v52  ;;  %vm1892_vm9 = vmand %vm373_vm2, %vm407_vm3  ;;  %vm405_vm2 = vcmp.lt.s32.totalorder %v336_v51, %v1591_v50  ;;  %vm370_vm3 = vcmp.ge.s32.totalorder %v335_v53, %v1589_v49 }
  0x3e   :  { %1205 = vmatpush.msk.msrb.mxu1 %vm1819_vm8, %v1335_v52  ;;  %vm1867_vm8 = vmand %vm374_vm4, %vm408_vm11  ;;  %vm372_vm11 = vcmp.ge.s32.totalorder %v337_v44, %v1589_v49  ;;  %1227 = vmatpush.msk.msrb.mxu0 %vm1786_vm12, %v1335_v52  ;;  %vm523_vm12 = vcmp.lt.s32.totalorder %v516_v0, %v521_v7 }
  0x3f   :  { %1193 = vmatpush.msk.msrb.mxu2 %vm1833_vm6, %v1335_v52  ;;  %v2297_v43 = vsel %vm1867_vm8, 4294967295, %v2296_v43  ;;  %vm1883_vm4 = vmand %vm354_vm10, %vm388_vm0  ;;  %vm371_vm0 = vcmp.ge.s32.totalorder %v336_v51, %v1589_v49 }
  0x40   :  { %1206 = vmatpush.msk.msrb.mxu1 %vm1845_vm15, %v1335_v52  ;;  %vm404_vm15 = vcmp.lt.s32.totalorder %v335_v53, %v1591_v50  ;;  %vm1912_vm13 = vmand %vm371_vm0, %vm405_vm2  ;;  %1228 = vmatpush.msk.msrb.mxu0 %vm1806_vm7, %v1335_v52  ;;  %vm519_vm7 = vcmp.ge.s32.totalorder %v516_v0, %v517_v1  ;;  %vm2317_vm0 = vnez %v2269_v12  ;;  %vm2318_vm2 = vnez %v2273_v14 }
  0x41   :  { %1194 = vmatpush.msk.msrb.mxu2 %vm1855_vm5, %v1335_v52 }
  0x42   :  { %1207 = vmatpush.msk.msrb.mxu1 %vm1867_vm8, %v1335_v52  ;;  %vm406_vm8 = vcmp.lt.s32.totalorder %v337_v44, %v1591_v50  ;;  %1229 = vmatpush.msk.msrb.mxu0 %vm1833_vm6, %v1335_v52  ;;  %vm522_vm6 = vcmp.lt.s32.totalorder %v1582_v45, %v521_v7 }
  0x43   :  { %1195 = vmatpush.msk.msrb.mxu2 %vm1883_vm4, %v1335_v52  ;;  %vm1904_vm10 = vmand %vm372_vm11, %vm406_vm8  ;;  %vm2316_vm11 = vnez %v2265_v6 }
  0x44   :  { %1208 = vmatpush.msk.msrb.mxu1 %vm1892_vm9, %v1335_v52  ;;  %vm1922_vm8 = vmand %vm370_vm3, %vm404_vm15  ;;  %1230 = vmatpush.msk.msrb.mxu0 %vm1855_vm5, %v1335_v52  ;;  %vm2319_vm3 = vnez %v2277_v22 }
  0x45   :  { %vm1961_vm15 = vmand %vm519_vm7, %vm523_vm12  ;;  %vm2320_vm7 = vnez %v2281_v24  ;;  %vm2322_vm12 = vnez %v2289_v33 }
  0x46   :  { %1209 = vmatpush.msk.msrb.mxu1 %vm1904_vm10, %v1335_v52  ;;  %1231 = vmatpush.msk.msrb.mxu0 %vm1883_vm4, %v1335_v52  ;;  %vm1976_vm5 = vmand %vm1945_vm1, %vm522_vm6  ;;  %vm2315_vm4 = vnez %v2261_v4  ;;  %vm2321_vm1 = vnez %v2285_v30  ;;  %vm2323_vm6 = vnez %v2293_v41 }
  0x47   :  { %1214 = vmatpush.msk.msrb.mxu3 %vm1961_vm15, %v1335_v52  ;;  %1212 = vmatpush.msk.msra.mxu2 %vm1976_vm5, %v1335_v52 }
  0x48   :  { %1210 = vmatpush.msk.msrb.mxu1 %vm1912_vm13, %v1335_v52 }
  0x49   :  { %1250 = vmatpush.msk.msra.mxu3 %vm1961_vm15, %v1335_v52 }
  0x4a   :  { %1211 = vmatpush.msk.msrb.mxu1 %vm1922_vm8, %v1335_v52 }
  0x4c   :  { %1232 = vmatpush.msk.msra.mxu1 %vm1622_vm14, %v1335_v52  ;;  %vm2312_vm14 = vnez %v2257_v62 }
  0x4e   :  { %1233 = vmatpush.msk.msra.mxu1 %vm2312_vm14, %v1335_v52  ;;  %vm2324_vm14 = vnez %v2297_v43 }
  0x50   :  { %1234 = vmatpush.msk.msra.mxu1 %vm2315_vm4, %v1335_v52  ;;  %vm589_vm4 = vcmask 64512  }
  0x52   :  { %1235 = vmatpush.msk.msra.mxu1 %vm2316_vm11, %v1335_v52 }
  0x54   :  { %1236 = vmatpush.msk.msra.mxu1 %vm2317_vm0, %v1335_v52 }
  0x56   :  { %1237 = vmatpush.msk.msra.mxu1 %vm2318_vm2, %v1335_v52 }
  0x58   :  { %1238 = vmatpush.msk.msra.mxu1 %vm2319_vm3, %v1335_v52 }
  0x5a   :  { %1239 = vmatpush.msk.msra.mxu1 %vm2320_vm7, %v1335_v52 }
  0x5c   :  { %1240 = vmatpush.msk.msra.mxu1 %vm2321_vm1, %v1335_v52 }
  0x5e   :  { %1241 = vmatpush.msk.msra.mxu1 %vm2322_vm12, %v1335_v52 }
  0x60   :  { %1242 = vmatpush.msk.msra.mxu1 %vm2323_vm6, %v1335_v52 }
  0x62   :  { %1243 = vmatpush.msk.msra.mxu1 %vm2324_vm14, %v1335_v52 }
  0x64   :  { %1244 = vmatpush.msk.msra.mxu1 %vm1892_vm9, %v1335_v52 }
  0x66   :  { %1245 = vmatpush.msk.msra.mxu1 %vm1904_vm10, %v1335_v52 }
  0x68   :  { %1246 = vmatpush.msk.msra.mxu1 %vm1912_vm13, %v1335_v52 }
  0x6a   :  { %1247 = vmatpush.msk.msra.mxu1 %vm1922_vm8, %v1335_v52 }
  0xa0   :  { %v1736_v17 = vpop.f32.mrf.mxu0 }
  0xa1   :  { %v1747_v21 = vpop.f32.mrf.mxu1  ;;  %v252_v3 = vadd.f32 %v1736_v17, %v58_v56 }
  0xa3   :  { %v1957_v10 = vadd.f32 %v1747_v21, %v252_v3 }
  0xa7   :  { %v1814_v32 = vpop.f32.mrf.mxu2 }
  0xa8   :  { %v1828_v36 = vpop.f32.mrf.mxu3  ;;  %v253_v37 = vpop.f32.mrf.mxu0  ;;  %v290_v19 = vadd.f32 %v1814_v32, %v59_v46 }
  0xa9   :  { %v272_v40 = vpop.f32.mrf.mxu1  ;;  %v254_v63 = vadd.f32 %v253_v37, %v58_v56 }
  0xaa   :  { %v309_v4 = vadd.f32 %v1828_v36, %v290_v19 }
  0xab   :  { %v1942_v8 = vadd.f32 %v272_v40, %v254_v63 }
  0xad   :  { %v530_v62 = vadd.f32 %v1942_v8, %v1957_v10 }
  0xaf   :  { %v291_v57 = vpop.f32.mrf.mxu2 }
  0xb0   :  { %v310_v60 = vpop.f32.mrf.mxu3  ;;  %v256_v61 = vpop.f32.mrf.mxu0  ;;  %v292_v59 = vadd.f32 %v291_v57, %v59_v46 }
  0xb1   :  { %v275_v49 = vpop.f32.mrf.mxu1  ;;  %v257_v5 = vadd.f32 %v256_v61, %v58_v56 }
  0xb2   :  { %v311_v26 = vadd.f32 %v310_v60, %v292_v59 }
  0xb3   :  { %v1959_v11 = vadd.f32 %v275_v49, %v257_v5 }
  0xb4   :  { %v539_v32 = vadd.f32 %v311_v26, %v309_v4 }
  0xb5   :  { %v531_v23 = vadd.f32 %v530_v62, %v1959_v11 }
  0xb7   :  { %v294_v13 = vpop.f32.mrf.mxu2 }
  0xb8   :  { %v313_v45 = vpop.f32.mrf.mxu3  ;;  %v258_v16 = vpop.f32.mrf.mxu0  ;;  %v295_v20 = vadd.f32 %v294_v13, %v59_v46 }
  0xb9   :  { %v259_v18 = vadd.f32 %v258_v16, %v58_v56  ;;  %v277_v21 = vpop.f32.mrf.mxu1 }
  0xba   :  { %v314_v28 = vadd.f32 %v313_v45, %v295_v20 }
  0xbb   :  { %v278_v25 = vadd.f32 %v277_v21, %v259_v18 }
  0xbc   :  { %v540_v37 = vadd.f32 %v539_v32, %v314_v28 }
  0xbd   :  { %v532_v27 = vadd.f32 %v531_v23, %v278_v25 }
  0xbf   :  { %v533_v29 = vrot.slane %v532_v27, 4  ;;  %v296_v31 = vpop.f32.mrf.mxu2 }
  0xc0   :  { %v297_v34 = vadd.f32 %v296_v31, %v59_v46  ;;  %v315_v6 = vpop.f32.mrf.mxu3 }
  0xc1   :  { %v534_v35 = vadd.f32 %v533_v29, %v532_v27 }
  0xc2   :  { %v316_v12 = vadd.f32 %v315_v6, %v297_v34 }
  0xc3   :  { %v535_v38 = vrot.slane %v534_v35, 2 }
  0xc4   :  { %v541_v36 = vadd.f32 %v540_v37, %v316_v12 }
  0xc5   :  { %v536_v39 = vadd.f32 %v535_v38, %v534_v35 }
  0xc6   :  { %v542_v14 = vrot.slane %v541_v36, 4 }
  0xc7   :  { %v537_v40 = vrot.slane %v536_v39, 1 }
  0xc8   :  { %v543_v22 = vadd.f32 %v542_v14, %v541_v36  ;;  %v776_v14 = vld [vmem:[%s2239_s4] sm:$0x1] }
  0xc9   :  { %v538_v42 = vadd.f32 %v537_v40, %v536_v39 }
  0xca   :  { %v544_v24 = vrot.slane %v543_v22, 2 }
  0xcb   :  { %564 = vmatmul.f32.vlgmr.msrb.gmra.mxu2 %v538_v42 }
  0xcc   :  { %v545_v30 = vadd.f32 %v544_v24, %v543_v22  ;;  %1248 = vmatpush.msk.msrb.mxu2 %vm1976_vm5, %v1335_v52 }
  0xce   :  { %v546_v33 = vrot.slane %v545_v30, 1 }
  0xd0   :  { %v547_v41 = vadd.f32 %v546_v33, %v545_v30 }
  0xd2   :  { %584 = vmatmul.f32.vlgmr.msrb.gmra.mxu1 %v547_v41 }
 0x14e   :  { %v565_v43 = vpop.f32.mrf.mxu2 }
 0x14f   :  { %v585_v44 = vpop.f32.mrf.mxu1 }
 0x150   :  { %v586_v47 = vadd.f32 %v585_v44, %v565_v43 }
 0x152   :  { %v588_v48 = vmul.f32 0.0009765625, %v586_v47 }
 0x154   :  { %1213 = vmatmul.msk.f32.vlgmr.msra.gmra.mxu2 %vm589_vm4, %v588_v48  ;;  %1215 = vmatmul.msk.f32.vlgmr.msrb.gmra.mxu3 %vm589_vm4, %v588_v48 }
 0x155   :  { %1252 = vmatpush.msk.msra.mxu2 %vm1976_vm5, %v1335_v52  ;;  %1254 = vmatpush.msk.msrb.mxu3 %vm1961_vm15, %v1335_v52 }
 0x1d7   :  { %v610_v51 = vpop.f32.mrf.mxu2  ;;  %v630_v53 = vpop.f32.mrf.mxu3 }
 0x1d8   :  { %v633_v54 = vperm.slane %v610_v51, 0  ;;  %v634_v55 = vperm.slane %v630_v53, 0 }
 0x1da   :  { %v2045_v56 = vsub.f32 %v1957_v10, %v633_v54  ;;  %v2048_v57 = vsub.f32 %v1942_v8, %v633_v54  ;;  %v2051_v58 = vsub.f32 %v1959_v11, %v633_v54  ;;  %v2053_v60 = vsub.f32 %v309_v4, %v634_v55 }
 0x1db   :  { %v2055_v61 = vsub.f32 %v311_v26, %v634_v55  ;;  %v2057_v63 = vsub.f32 %v314_v28, %v634_v55  ;;  %v2059_v52 = vsub.f32 %v278_v25, %v633_v54  ;;  %v2065_v0 = vsub.f32 %v316_v12, %v634_v55  ;;  %v710_v12 = vld [vmem:[%s2238_s3] sm:$0x1] }
 0x1dc   :  { %v643_v49 = vmul.f32 %v2045_v56, %v2045_v56  ;;  %v645_v50 = vmul.f32 %v2048_v57, %v2048_v57  ;;  %v644_v1 = vmul.f32 %v2053_v60, %v2053_v60  ;;  %v647_v3 = vmul.f32 %v2051_v58, %v2051_v58 }
 0x1dd   :  { %v646_v2 = vmul.f32 %v2055_v61, %v2055_v61  ;;  %v648_v7 = vmul.f32 %v2057_v63, %v2057_v63  ;;  %v649_v9 = vmul.f32 %v2059_v52, %v2059_v52  ;;  %v650_v10 = vmul.f32 %v2065_v0, %v2065_v0 }
 0x1de   :  { %v651_v5 = vadd.f32 %v645_v50, %v643_v49 }
 0x1df   :  { %v660_v8 = vadd.f32 %v646_v2, %v644_v1 }
 0x1e0   :  { %v652_v46 = vadd.f32 %v651_v5, %v647_v3 }
 0x1e1   :  { %v661_v11 = vadd.f32 %v660_v8, %v648_v7 }
 0x1e2   :  { %v653_v13 = vadd.f32 %v652_v46, %v649_v9 }
 0x1e3   :  { %v662_v15 = vadd.f32 %v661_v11, %v650_v10 }
 0x1e4   :  { %v654_v59 = vrot.slane %v653_v13, 4 }
 0x1e5   :  { %v663_v45 = vrot.slane %v662_v15, 4 }
 0x1e6   :  { %v655_v16 = vadd.f32 %v654_v59, %v653_v13 }
 0x1e7   :  { %v664_v17 = vadd.f32 %v663_v45, %v662_v15 }
 0x1e8   :  { %v656_v62 = vrot.slane %v655_v16, 2 }
 0x1e9   :  { %v665_v18 = vrot.slane %v664_v17, 2 }
 0x1ea   :  { %v657_v19 = vadd.f32 %v656_v62, %v655_v16 }
 0x1eb   :  { %v666_v20 = vadd.f32 %v665_v18, %v664_v17 }
 0x1ec   :  { %v658_v21 = vrot.slane %v657_v19, 1 }
 0x1ed   :  { %v667_v23 = vrot.slane %v666_v20, 1 }
 0x1ee   :  { %v659_v25 = vadd.f32 %v658_v21, %v657_v19 }
 0x1ef   :  { %v668_v26 = vadd.f32 %v667_v23, %v666_v20 }
 0x1f0   :  { %685 = vmatmul.f32.vlgmr.msrb.gmra.mxu0 %v659_v25 }
 0x1f1   :  { %705 = vmatmul.f32.vlgmr.msra.gmra.mxu1 %v668_v26 }
 0x26d   :  { %v686_v27 = vpop.f32.mrf.mxu0 }
 0x26e   :  { %v706_v4 = vpop.f32.mrf.mxu1 }
 0x26f   :  { %v707_v28 = vadd.f32 %v706_v4, %v686_v27 }
 0x271   :  { %v709_v29 = vmul.f32 0.0009765625, %v707_v28 }
 0x273   :  { %v711_v31 = vadd.f32 1e-05, %v709_v29 }
 0x275   :  { %1301 = vrsqrt.f32 %v711_v31  ;;  %vm718_vm9 = vweird.f32 %v711_v31 }
 0x27b   :  { %v1302_v32 = vpop.eup %1301 }
 0x27c   :  { %v713_v34 = vmul.f32 %v1302_v32, %v711_v31  ;;  %vm719_vm13 = vweird.f32 %v1302_v32 }
 0x27d   :  { %vm720_vm10 = vmor %vm718_vm9, %vm719_vm13 }
 0x27e   :  { %v714_v35 = vmul.f32 %v1302_v32, %v713_v34 }
 0x280   :  { %v715_v6 = vmul.f32 0.5, %v714_v35 }
 0x282   :  { %v716_v37 = vsub.f32 1.5, %v715_v6 }
 0x284   :  { %v717_v38 = vmul.f32 %v1302_v32, %v716_v37 }
 0x286   :  { %v721_v36 = vsel %vm720_vm10, %v1302_v32, %v717_v38 }
 0x287   :  { %v722_v39 = vmul.f32 %v721_v36, %v710_v12 }
 0x289   :  { %1249 = vmatmul.msk.f32.vlgmr.msrb.gmra.mxu2 %vm589_vm4, %v722_v39  ;;  %1251 = vmatmul.msk.f32.vlgmr.msra.gmra.mxu3 %vm589_vm4, %v722_v39 }
 0x291   :  { %1253 = vmatmul.msk.f32.vlgmr.msra.gmra.mxu2 %vm589_vm4, %v776_v14  ;;  %1255 = vmatmul.msk.f32.vlgmr.msrb.gmra.mxu3 %vm589_vm4, %v776_v14 }
 0x30c   :  { %v743_v40 = vpop.f32.mrf.mxu2  ;;  %v763_v22 = vpop.f32.mrf.mxu3 }
 0x30d   :  { %v766_v42 = vperm.slane %v743_v40, 0  ;;  %v767_v24 = vperm.slane %v763_v22, 0 }
 0x30f   :  { %v768_v30 = vmul.f32 %v766_v42, %v2045_v56  ;;  %v770_v33 = vmul.f32 %v766_v42, %v2048_v57  ;;  %v772_v44 = vmul.f32 %v766_v42, %v2051_v58  ;;  %v774_v47 = vmul.f32 %v766_v42, %v2059_v52 }
 0x310   :  { %v769_v53 = vmul.f32 %v767_v24, %v2053_v60  ;;  %v771_v54 = vmul.f32 %v767_v24, %v2055_v61  ;;  %v773_v57 = vmul.f32 %v767_v24, %v2057_v63  ;;  %v775_v63 = vmul.f32 %v767_v24, %v2065_v0 }
 0x314   :  { %v797_v41 = vpop.f32.mrf.mxu2  ;;  %v817_v43 = vpop.f32.mrf.mxu3 }
 0x315   :  { %v820_v48 = vperm.slane %v797_v41, 0  ;;  %v821_v51 = vperm.slane %v817_v43, 0 }
 0x317   :  { %v2095_v55 = vadd.f32 %v820_v48, %v768_v30  ;;  %v2097_v49 = vadd.f32 %v820_v48, %v770_v33  ;;  %v2099_v50 = vadd.f32 %v820_v48, %v772_v44  ;;  %v2101_v56 = vadd.f32 %v820_v48, %v774_v47 }
 0x318   :  { %v2104_v1 = vadd.f32 %v821_v51, %v769_v53  ;;  %v2109_v2 = vadd.f32 %v821_v51, %v771_v54  ;;  %v2112_v3 = vadd.f32 %v821_v51, %v773_v57  ;;  %v2117_v8 = vadd.f32 %v821_v51, %v775_v63 }
 0x319   :  { %v1256_v58 = vmul.f32 -1.442695, %v2095_v55  ;;  %v1258_v52 = vmul.f32 -1.442695, %v2097_v49  ;;  %v1260_v60 = vmul.f32 -1.442695, %v2099_v50 }
 0x31a   :  { %v1262_v61 = vmul.f32 -1.442695, %v2101_v56  ;;  %v1257_v5 = vmul.f32 -1.442695, %v2104_v1  ;;  %v1259_v7 = vmul.f32 -1.442695, %v2109_v2 }
 0x31b   :  { %1303 = vpow2.f32 %v1256_v58  ;;  %v1261_v9 = vmul.f32 -1.442695, %v2112_v3  ;;  %v1263_v59 = vmul.f32 -1.442695, %v2117_v8 }
 0x31c   :  { %1305 = vpow2.f32 %v1258_v52 }
 0x31d   :  { %1307 = vpow2.f32 %v1260_v60 }
 0x31e   :  { %1309 = vpow2.f32 %v1262_v61 }
 0x31f   :  { %1311 = vpow2.f32 %v1257_v5 }
 0x320   :  { %1313 = vpow2.f32 %v1259_v7 }
 0x321   :  { %v1304_v46 = vpop.eup %1303  ;;  %1315 = vpow2.f32 %v1261_v9 }
 0x322   :  { %v1306_v10 = vpop.eup %1305  ;;  %v854_v11 = vadd.f32 1.0, %v1304_v46 }
 0x323   :  { %v1308_v13 = vpop.eup %1307  ;;  %v2120_v15 = vadd.f32 1.0, %v1306_v10 }
 0x324   :  { %v1310_v0 = vpop.eup %1309  ;;  %v2123_v45 = vadd.f32 1.0, %v1308_v13  ;;  %1317 = vrcp.f32 %v854_v11  ;;  %v871_v18 = vand.u32 2147483647, %v854_v11  ;;  %v873_v19 = vand.u32 2147483648, %v854_v11 }
 0x325   :  { %v2125_v16 = vadd.f32 1.0, %v1310_v0  ;;  %1319 = vrcp.f32 %v2120_v15  ;;  %v1312_v17 = vpop.eup %1311  ;;  %v901_v20 = vand.u32 2147483647, %v2120_v15  ;;  %v903_v21 = vand.u32 2147483648, %v2120_v15 }
 0x326   :  { %1321 = vrcp.f32 %v2123_v45  ;;  %v1314_v62 = vpop.eup %1313  ;;  %v931_v25 = vand.u32 2147483647, %v2123_v45  ;;  %v933_v26 = vand.u32 2147483648, %v2123_v45  ;;  %vm867_vm8 = vweird.f32 %v854_v11 }
 0x327   :  { %1323 = vpow2.f32 %v1263_v59  ;;  %v1316_v23 = vpop.eup %1315  ;;  %vm897_vm15 = vweird.f32 %v2120_v15  ;;  %v2135_v4 = vadd.f32 1.0, %v1312_v17  ;;  %v2137_v28 = vadd.f32 1.0, %v1314_v62 }
 0x328   :  { %1325 = vrcp.f32 %v2125_v16  ;;  %vm2139_vm5 = vcmp.eq.f32.partialorder %v871_v18, 8.507059e+37  ;;  %v874_v34 = vor.u32 1.1754944e-38, %v873_v19  ;;  %vm927_vm11 = vweird.f32 %v2123_v45 }
 0x329   :  { %vm2145_vm0 = vcmp.eq.f32.partialorder %v901_v20, 8.507059e+37  ;;  %v904_v12 = vor.u32 1.1754944e-38, %v903_v21  ;;  %1327 = vrcp.f32 %v2135_v4  ;;  %vm2151_vm2 = vcmp.eq.f32.partialorder %v931_v25, 8.507059e+37 }
 0x32a   :  { %v1318_v27 = vpop.eup %1317  ;;  %v934_v40 = vor.u32 1.1754944e-38, %v933_v26  ;;  %vm957_vm3 = vweird.f32 %v2125_v16  ;;  %v961_v24 = vand.u32 2147483647, %v2125_v16  ;;  %v2157_v30 = vadd.f32 1.0, %v1316_v23 }
 0x32b   :  { %v1320_v29 = vpop.eup %1319  ;;  %v863_v31 = vmul.f32 %v1318_v27, %v854_v11  ;;  %1329 = vrcp.f32 %v2137_v28  ;;  %vm868_vm7 = vweird.f32 %v1318_v27  ;;  %v963_v47 = vand.u32 2147483648, %v2125_v16 }
 0x32c   :  { %v1322_v35 = vpop.eup %1321  ;;  %v893_v6 = vmul.f32 %v1320_v29, %v2120_v15  ;;  %vm898_vm1 = vweird.f32 %v1320_v29  ;;  %vm869_vm6 = vmor %vm867_vm8, %vm868_vm7  ;;  %vm2165_vm4 = vcmp.eq.f32.partialorder %v961_v24, 8.507059e+37  ;;  %1331 = vrcp.f32 %v2157_v30 }
 0x32d   :  { %v1324_v38 = vpop.eup %1323  ;;  %v864_v36 = vsub.f32 1.0, %v863_v31  ;;  %v923_v39 = vmul.f32 %v1322_v35, %v2123_v45  ;;  %vm928_vm12 = vweird.f32 %v1322_v35  ;;  %vm899_vm13 = vmor %vm897_vm15, %vm898_vm1  ;;  %v964_v10 = vor.u32 1.1754944e-38, %v963_v47 }
 0x32e   :  { %v1326_v22 = vpop.eup %1325  ;;  %v894_v42 = vsub.f32 1.0, %v893_v6  ;;  %v2162_v48 = vadd.f32 1.0, %v1324_v38  ;;  %vm929_vm9 = vmor %vm927_vm11, %vm928_vm12  ;;  %v886_v11 = vand.u32 2147483647, %v2135_v4  ;;  %v918_v21 = vand.u32 2147483648, %v2137_v28 }
 0x32f   :  { %v865_v33 = vmul.f32 %v1318_v27, %v864_v36  ;;  %v924_v41 = vsub.f32 1.0, %v923_v39  ;;  %v953_v43 = vmul.f32 %v1326_v22, %v2125_v16  ;;  %v1328_v57 = vpop.eup %1327  ;;  %vm958_vm14 = vweird.f32 %v1326_v22 }
 0x330   :  { %v895_v44 = vmul.f32 %v1320_v29, %v894_v42  ;;  %v878_v63 = vmul.f32 %v1328_v57, %v2135_v4  ;;  %vm959_vm10 = vmor %vm957_vm3, %vm958_vm14  ;;  %vm883_vm8 = vweird.f32 %v1328_v57  ;;  %vm882_vm15 = vweird.f32 %v2135_v4 }
 0x331   :  { %v866_v51 = vadd.f32 %v1318_v27, %v865_v33  ;;  %v925_v53 = vmul.f32 %v1322_v35, %v924_v41  ;;  %v954_v54 = vsub.f32 1.0, %v953_v43  ;;  %v1330_v7 = vpop.eup %1329  ;;  %v916_v26 = vand.u32 2147483647, %v2137_v28  ;;  %vm884_vm11 = vmor %vm882_vm15, %vm883_vm8 }
 0x332   :  { %v896_v58 = vadd.f32 %v1320_v29, %v895_v44  ;;  %v879_v62 = vsub.f32 1.0, %v878_v63  ;;  %v908_v18 = vmul.f32 %v1330_v7, %v2137_v28  ;;  %v1332_v23 = vpop.eup %1331  ;;  %1333 = vrcp.f32 %v2162_v48 }
 0x333   :  { %v870_v60 = vsel %vm869_vm6, %v1318_v27, %v866_v51  ;;  %v926_v61 = vadd.f32 %v1322_v35, %v925_v53  ;;  %v955_v5 = vmul.f32 %v1326_v22, %v954_v54  ;;  %v938_v27 = vmul.f32 %v1332_v23, %v2157_v30 }
 0x334   :  { %v875_v9 = vsel %vm2139_vm5, %v874_v34, %v870_v60  ;;  %v900_v46 = vsel %vm899_vm13, %v1320_v29, %v896_v58  ;;  %v909_v25 = vsub.f32 1.0, %v908_v18  ;;  %vm913_vm5 = vweird.f32 %v1330_v7 }
 0x335   :  { %v905_v13 = vsel %vm2145_vm0, %v904_v12, %v900_v46  ;;  %v930_v15 = vsel %vm929_vm9, %v1322_v35, %v926_v61  ;;  %v956_v59 = vadd.f32 %v1326_v22, %v955_v5  ;;  %v982_v0 = vmul.f32 %v875_v9, %v2095_v55 }
 0x336   :  { %v935_v17 = vsel %vm2151_vm2, %v934_v40, %v930_v15  ;;  %v984_v45 = vmul.f32 %v905_v13, %v2097_v49  ;;  %v888_v55 = vand.u32 2147483648, %v2135_v4  ;;  %v880_v49 = vmul.f32 %v1328_v57, %v879_v62 }
 0x337   :  { %v960_v19 = vsel %vm959_vm10, %v1326_v22, %v956_v59  ;;  %v986_v20 = vmul.f32 %v935_v17, %v2099_v50  ;;  %990 = vst [vmem:[%s2240_s5] sm:$0xff] %v982_v0  ;;  %v910_v31 = vmul.f32 %v1330_v7, %v909_v25  ;;  %vm887_vm0 = vcmp.eq.f32.partialorder %v886_v11, 8.507059e+37 }
 0x338   :  { %v965_v16 = vsel %vm2165_vm4, %v964_v10, %v960_v19  ;;  %992 = vst [vmem:[%s2240_s5 + $0x10] sm:$0xff] %v984_v45  ;;  %v881_v29 = vadd.f32 %v1328_v57, %v880_v49  ;;  %vm912_vm2 = vweird.f32 %v2137_v28  ;;  %v939_v32 = vsub.f32 1.0, %v938_v27  ;;  %v1334_v28 = vpop.eup %1333 }
 0x339   :  { %v988_v50 = vmul.f32 %v965_v16, %v2101_v56  ;;  %994 = vst [vmem:[%s2240_s5 + $0x20] sm:$0xff] %v986_v20  ;;  %v889_v56 = vor.u32 1.1754944e-38, %v888_v55  ;;  %v911_v34 = vadd.f32 %v1330_v7, %v910_v31  ;;  %v919_v35 = vor.u32 1.1754944e-38, %v918_v21  ;;  %vm914_vm3 = vmor %vm912_vm2, %vm913_vm5 }
 0x33a   :  { %v885_v4 = vsel %vm884_vm11, %v1328_v57, %v881_v29  ;;  %v948_v6 = vand.u32 2147483648, %v2157_v30  ;;  %v940_v12 = vmul.f32 %v1332_v23, %v939_v32  ;;  %vm943_vm7 = vweird.f32 %v1332_v23 }
 0x33b   :  { %996 = vst [vmem:[%s2240_s5 + $0x30] sm:$0xff] %v988_v50  ;;  %v890_v37 = vsel %vm887_vm0, %v889_v56, %v885_v4  ;;  %v946_v38 = vand.u32 2147483647, %v2157_v30  ;;  %v915_v36 = vsel %vm914_vm3, %v1330_v7, %v911_v34  ;;  %vm917_vm1 = vcmp.eq.f32.partialorder %v916_v26, 8.507059e+37 }
 0x33c   :  { %v983_v39 = vmul.f32 %v890_v37, %v2104_v1  ;;  %v920_v14 = vsel %vm917_vm1, %v919_v35, %v915_v36  ;;  %v941_v40 = vadd.f32 %v1332_v23, %v940_v12  ;;  %vm942_vm12 = vweird.f32 %v2157_v30 }
 0x33d   :  { %vm944_vm6 = vmor %vm942_vm12, %vm943_vm7  ;;  %v949_v22 = vor.u32 1.1754944e-38, %v948_v6  ;;  %v985_v42 = vmul.f32 %v920_v14, %v2109_v2  ;;  %vm947_vm14 = vcmp.eq.f32.partialorder %v946_v38, 8.507059e+37  ;;  %v968_v33 = vmul.f32 %v1334_v28, %v2162_v48 }
 0x33e   :  { %991 = vst [vmem:[%s2240_s5 + $0x8] sm:$0xff] %v983_v39  ;;  %v945_v24 = vsel %vm944_vm6, %v1332_v23, %v941_v40  ;;  %v978_v43 = vand.u32 2147483648, %v2162_v48  ;;  %vm973_vm4 = vweird.f32 %v1334_v28  ;;  %v976_v2 = vand.u32 2147483647, %v2162_v48 }
 0x33f   :  { %v950_v41 = vsel %vm947_vm14, %v949_v22, %v945_v24  ;;  %993 = vst [vmem:[%s2240_s5 + $0x18] sm:$0xff] %v985_v42  ;;  %v969_v1 = vsub.f32 1.0, %v968_v33  ;;  %vm972_vm13 = vweird.f32 %v2162_v48 }
 0x340   :  { %v987_v30 = vmul.f32 %v950_v41, %v2112_v3  ;;  %vm974_vm9 = vmor %vm972_vm13, %vm973_vm4  ;;  %v979_v51 = vor.u32 1.1754944e-38, %v978_v43  ;;  %vm977_vm10 = vcmp.eq.f32.partialorder %v976_v2, 8.507059e+37 }
 0x341   :  { %v970_v44 = vmul.f32 %v1334_v28, %v969_v1 }
 0x342   :  { %995 = vst [vmem:[%s2240_s5 + $0x28] sm:$0xff] %v987_v30 }
 0x343   :  { %v971_v47 = vadd.f32 %v1334_v28, %v970_v44 }
 0x345   :  { %v975_v53 = vsel %vm974_vm9, %v1334_v28, %v971_v47 }
 0x346   :  { %v980_v54 = vsel %vm977_vm10, %v979_v51, %v975_v53 }
 0x347   :  { %v989_v3 = vmul.f32 %v980_v54, %v2117_v8 }
 0x349   :  { %997 = vst [vmem:[%s2240_s5 + $0x38] sm:$0xff] %v989_v3 }

</bundles_post_ra>
